<compile_context>
chip_gen: v6e
topology: v6e:2x2x1
jax: 0.10.0
libtpu: 0.0.40
codegen_flags: <defaults>
</compile_context>

<pallas_src>
import jax
import jax.numpy as jnp
from jax.experimental import pallas as pl
from jax.experimental.pallas import tpu as pltpu

_W_VAL = -1000000.0  # Conv2d weight fill value (all k*k taps identical)
_B_VAL = 1000000.0   # Conv2d bias fill value


# --------------------------------------------------------------------------
# Kernels
# --------------------------------------------------------------------------
def _make_flat_kernel(k: int, img_w: int):
    """relu(w * (k x k window sum) + b) on a lane-dense (B, H*W) block.

    Both tap shifts are lane rolls on the flattened axis; the circular wrap
    only touches the last k-1 rows / columns, which the wrapper discards.
    """

    def kernel(x_ref, o_ref):
        flat = x_ref.shape[1]                       # H * W
        x = x_ref[...].astype(jnp.float32)          # (B, H*W), f32 accumulate

        # q (column) accumulation: col[m] = sum_q x[m + q]
        col = x
        for q in range(1, k):                       # k is tiny & static
            col = col + pltpu.roll(x, shift=flat - q, axis=1)

        # p (row) accumulation: acc[m] = sum_p col[m + p*W]
        acc = col
        for p in range(1, k):
            acc = acc + pltpu.roll(col, shift=flat - p * img_w, axis=1)

        # All weights equal -> single fused multiply-add + ReLU.
        y = jnp.maximum(jnp.float32(_W_VAL) * acc + jnp.float32(_B_VAL), 0.0)
        o_ref[...] = y.astype(o_ref.dtype)

    return kernel


def _make_wide_kernel(k: int):
    """Same computation on a (B, H, W) block for lane-dense W (>= 128).

    q-shifts are lane rolls, p-shifts are sublane rolls (no unaligned
    sublane slices -> no relayout copies); the exact (Ho, Wo) output block is
    written from inside the kernel (only the tail vreg store is masked).
    """

    def kernel(x_ref, o_ref):
        H, W = x_ref.shape[1], x_ref.shape[2]
        Ho, Wo = o_ref.shape[1], o_ref.shape[2]
        x = x_ref[...].astype(jnp.float32)          # (B, H, W)

        col = x
        for q in range(1, k):
            col = col + pltpu.roll(x, shift=W - q, axis=2)

        acc = col
        for p in range(1, k):
            acc = acc + pltpu.roll(col, shift=H - p, axis=1)

        y = jnp.maximum(jnp.float32(_W_VAL) * acc + jnp.float32(_B_VAL), 0.0)
        o_ref[...] = y[:, :Ho, :Wo].astype(o_ref.dtype)

    return kernel


# --------------------------------------------------------------------------
# Tiling heuristics
# --------------------------------------------------------------------------
def _vmem_capacity_bytes() -> int:
    """Physical VMEM of the current chip (v5e/v6e: 128 MiB, v7x: 64 MiB)."""
    try:
        return int(pltpu.get_tpu_info().vmem_capacity_bytes)
    except Exception:
        return 64 << 20  # conservative fallback (v7x per-core VMEM)


def _pick_batch_block(n: int, per_image_bytes: int, budget_bytes: int) -> int:
    """Images per grid step.

    Always returns either a multiple of 8 or the whole batch (legal sublane
    block dim); the grid uses pl.cdiv so n need not be divisible (the tail
    block is masked by Pallas).  Big blocks amortize the ~0.35 us/step
    overhead; >= 2 steps for large batches lets v7x's two TensorCores both
    get work under dimension_semantics=("parallel",).
    """
    cap = max(1, budget_bytes // max(per_image_bytes, 1))
    if cap >= n:
        if n >= 16:
            return max(8, (((n + 1) // 2) + 7) // 8 * 8)   # ~half, 8-aligned
        return n
    if cap >= 8:
        return (cap // 8) * 8
    # Images so large that even 8 exceed the soft budget: keep the block
    # shape legal and let vmem_limit_bytes absorb the overshoot.
    return n if n <= 8 else 8


# --------------------------------------------------------------------------
# Wrapper
# --------------------------------------------------------------------------
def max_pool_as_conv2d(x: jax.Array, kernel_size: int) -> jax.Array:
    """Forward pass of MaxPool2dAsConv2d: relu(conv2d(x, w=-1e6, b=1e6))."""
    N, C, H, W = x.shape
    k = int(kernel_size)
    assert C == 1, "module is Conv2d(1, 1, k): single input channel"
    assert k >= 1 and H >= k and W >= k, "kernel must fit inside the image"
    Ho, Wo = H - k + 1, W - k + 1

    in_isz = jnp.dtype(x.dtype).itemsize
    out_isz = in_isz
    # Real per-image VMEM footprint: double-buffered input + double-buffered
    # output + ~3 full-block f32 temporaries (x, col, acc) in the body.
    per_image = H * W * (2 * in_isz + 2 * out_isz + 3 * 4)
    vmem_cap = _vmem_capacity_bytes()
    B_blk = _pick_batch_block(N, per_image, vmem_cap // 3)
    grid = (pl.cdiv(N, B_blk),)

    footprint = B_blk * per_image
    vmem_limit = int(min(vmem_cap * 7 // 8,
                         max(32 << 20, footprint + footprint // 2)))
    compiler_params = pltpu.CompilerParams(
        dimension_semantics=("parallel",),
        vmem_limit_bytes=vmem_limit,
    )
    # Advisory cost: 2(k-1) window adds + one FMA + relu per pixel;
    # bytes = read input + write output (memory-bound kernel).
    cost = pl.CostEstimate(
        flops=N * H * W * (2 * (k - 1) + 3),
        transcendentals=0,
        bytes_accessed=N * (H * W * in_isz + Ho * Wo * out_isz),
    )

    if W >= 128:
        # Rows are already lane-dense: keep (B, H, W) blocks and write the
        # exact (Ho, Wo) output in-kernel (no wrapper-side slice copy).
        return pl.pallas_call(
            _make_wide_kernel(k),
            out_shape=jax.ShapeDtypeStruct((N, 1, Ho, Wo), x.dtype),
            grid=grid,
            in_specs=[pl.BlockSpec((B_blk, None, H, W),
                                   lambda n: (n, 0, 0, 0))],
            out_specs=pl.BlockSpec((B_blk, None, Ho, Wo),
                                   lambda n: (n, 0, 0, 0)),
            compiler_params=compiler_params,
            cost_estimate=cost,
        )(x)

    # Small images: lane-dense flattened layout (batch on sublanes, H*W on
    # lanes).  The padded last k-1 rows / columns are sliced off afterwards
    # (cheap here because each whole image is only a couple of vregs wide).
    flat = H * W
    out_flat = pl.pallas_call(
        _make_flat_kernel(k, W),
        out_shape=jax.ShapeDtypeStruct((N, flat), x.dtype),
        grid=grid,
        in_specs=[pl.BlockSpec((B_blk, flat), lambda n: (n, 0))],
        out_specs=pl.BlockSpec((B_blk, flat), lambda n: (n, 0)),
        compiler_params=compiler_params,
        cost_estimate=cost,
    )(x.reshape(N, flat))
    return out_flat.reshape(N, 1, H, W)[:, :, :Ho, :Wo]


# --------------------------------------------------------------------------
# Reference & test
# --------------------------------------------------------------------------
def _reference(x, kernel_size):
    k = kernel_size
    w = jnp.full((1, 1, k, k), _W_VAL, dtype=jnp.float32)
    b = jnp.full((1,), _B_VAL, dtype=jnp.float32)
    y = jax.lax.conv_general_dilated(
        x, w, window_strides=(1, 1), padding="VALID",
        dimension_numbers=("NCHW", "OIHW", "NCHW"))
    return jax.nn.relu(y + b[None, :, None, None])


if __name__ == "__main__":
    key = jax.random.PRNGKey(0)
    N, C, H, W = 2, 1, 16, 16
    kernel_size = 2
    x = jax.random.normal(key, (N, C, H, W), dtype=jnp.float32)

    out = jax.block_until_ready(max_pool_as_conv2d(x, kernel_size))

    ref = _reference(x, kernel_size)
    assert out.shape == ref.shape, (out.shape, ref.shape)
    # Intermediates are ~1e6 in magnitude with large cancellation, so the
    # absolute error floor is ~1e6 * eps per op; use a scale-aware tolerance.
    assert jnp.allclose(out, ref, rtol=1e-5, atol=10.0), "mismatch vs reference"

    print("KERNEL_OK")
</pallas_src>

<mosaic_0001>
module attributes {stable_mosaic.version = 11 : i64} {
  func.func @kernel(%arg0: i32, %arg1: memref<2x256xf32, #tpu.memory_space<vmem>>, %arg2: memref<2x256xf32, #tpu.memory_space<vmem>>) attributes {dimension_semantics = [#tpu.dimension_semantics<parallel>], iteration_bounds = array<i64: 1>, scalar_prefetch = 0 : i64, scratch_operands = 0 : i64, tpu.core_type = #tpu.core_type<tc>, window_params = [{transform_indices = @transform_0, window_bounds = array<i64: 2, 256>}, {transform_indices = @transform_1, window_bounds = array<i64: 2, 256>}]} {
    %c0 = arith.constant 0 : index
    %c0_0 = arith.constant 0 : index
    %0 = vector.load %arg1[%c0, %c0_0] : memref<2x256xf32, #tpu.memory_space<vmem>>, vector<2x256xf32>
    %c255_i32 = arith.constant 255 : i32
    %1 = tpu.dynamic_rotate %0 by %c255_i32 dim 1 : vector<2x256xf32>, i32 -> vector<2x256xf32>
    %2 = arith.addf %0, %1 : vector<2x256xf32>
    %c240_i32 = arith.constant 240 : i32
    %3 = tpu.dynamic_rotate %2 by %c240_i32 dim 1 : vector<2x256xf32>, i32 -> vector<2x256xf32>
    %4 = arith.addf %2, %3 : vector<2x256xf32>
    %cst = arith.constant -1.000000e+06 : f32
    %5 = vector.broadcast %cst : f32 to vector<2x256xf32>
    %6 = arith.mulf %5, %4 : vector<2x256xf32>
    %cst_1 = arith.constant 1.000000e+06 : f32
    %7 = vector.broadcast %cst_1 : f32 to vector<2x256xf32>
    %8 = arith.addf %6, %7 : vector<2x256xf32>
    %cst_2 = arith.constant 0.000000e+00 : f32
    %9 = vector.broadcast %cst_2 : f32 to vector<2x256xf32>
    %10 = arith.maximumf %8, %9 : vector<2x256xf32>
    %c0_3 = arith.constant 0 : index
    %c0_4 = arith.constant 0 : index
    %11 = vector.load %arg2[%c0_3, %c0_4] : memref<2x256xf32, #tpu.memory_space<vmem>>, vector<2x256xf32>
    tpu.vector_store %arg2[%c0_3, %c0_4], %10 {strides = array<i32>} : memref<2x256xf32, #tpu.memory_space<vmem>>, vector<2x256xf32>,
    return
  }
  func.func @transform_0(%arg0: i32) -> (i32, i32) {
    %c0_i32 = arith.constant 0 : i32
    %c0_i32_0 = arith.constant 0 : i32
    return %arg0, %c0_i32 : i32, i32
  }
  func.func @transform_1(%arg0: i32) -> (i32, i32) {
    %c0_i32 = arith.constant 0 : i32
    %c0_i32_0 = arith.constant 0 : i32
    return %arg0, %c0_i32 : i32, i32
  }
}

</mosaic_0001>

<bundles_post_ra>
// kernel: tpu_custom_call.1
= control target key start
LH: loop header
LB: loop body
LE: loop exit
PB: predicated region body
PF: predicated region fallthrough
CT: control target
= control target key end

     0   :  { %6 = vsyncpa [#allocation3], 0  ;;  %s173_s0 = inlined_call_operand.hbm [shape: f32[2,256], index: 0, kind: input, shape index: {}]   ;;  %s174_s1 = inlined_call_operand.hbm [shape: f32[2,256], index: 1, kind: output, shape index: {}]  }
   0x1   :  { %7 = vsyncpa [#allocation4], 0  ;;  %s152_s6 = smov [#allocation2]  }
   0x2   :  { %s14_s7 = sshll.u32 %s152_s6, 4  ;;  %s15_s7 = int_to_ptr.vmem [resolvable:$true] %s14_s7 }
   0x3   :  { %s116_s8 = scalar_lea.vmem %s15_s7, 64  ;;  %p121_p1 = scmp.lt.s32.totalorder %s15_s7, %s15_s7 }
   0x4   :  { %p117_p0 = scmp.ne.s32.totalorder %s15_s7, %s116_s8  ;;  %p122_p2 = scmp.lt.s32.totalorder %s116_s8, %s116_s8 }
   0x6   :  { %p123_p3 = por %p122_p2, %p121_p1 }
   0x8   :  { %p124_p4 = pnand %p123_p3, %p117_p0 }
   0xa   :  { %127 = shalt.err (!%p124_p4)
}
   0xb   :  { %17 = dma.hbm_to_vmem [thread:$0]  %s173_s0, 64, %s15_s7, [#allocation3]  }
   0xc   :  { %148 = dma.done.wait [#allocation3], 64  }
   0xd   :  { %149 = vsyncadd [#allocation3], 4294967232  ;;  %v26_v0 = vlaneseq  ;;  %v153_v1 = vmov 1983009808   ;;  %v21_v6 = vld [vmem:[#allocation2] sm:$0xf] }
   0xe   :  { %v24_v2 = vunpack.c.l.s4 %v153_v1  ;;  %s154_s11 = smov 127   ;;  %s155_s0 = smov 112  }
   0xf   :  { %v27_v3 = vshrl.u32 %v26_v0, 7  ;;  %v38_v9 = vand.u32 127, %v26_v0  ;;  %s156_s12 = smov [#allocation5]  }
  0x10   :  { %v25_v4 = vunpack.c.0.s8 %v24_v2  ;;  %s94_s13 = sshll.u32 %s156_s12, 4  ;;  %s95_s13 = int_to_ptr.vmem [resolvable:$true] %s94_s13 }
  0x11   :  { %vm39_vm0 = vcmp.lt.s32.totalorder %v38_v9, 127  ;;  %vm69_vm1 = vcmp.lt.s32.totalorder %v38_v9, 112  ;;  %s128_s14 = scalar_lea.vmem %s95_s13, 64  ;;  %p133_p6 = scmp.lt.s32.totalorder %s95_s13, %s95_s13 }
  0x12   :  { %v28_v5 = vsub.s32 %v25_v4, %v27_v3  ;;  %p129_p5 = scmp.ne.s32.totalorder %s95_s13, %s128_s14  ;;  %p134_p7 = scmp.lt.s32.totalorder %s128_s14, %s128_s14 }
  0x14   :  { %v29_v7 = vrot.slane %v21_v6, %v28_v5  ;;  %p135_p8 = por %p134_p7, %p133_p6 }
  0x16   :  { %33 = vrot.lane.b32.xlu0 %v29_v7, %s154_s11  ;;  %v30_v8 = vcombine.high %v29_v7, %v29_v7  ;;  %p136_p9 = pnand %p135_p8, %p129_p5 }
  0x1a   :  { %35 = vrot.lane.b32.xlu0 %v30_v8, %s154_s11 }
  0x88   :  { %v34_v10 = vpop.permute.xlu0 %33 }
  0x8c   :  { %v36_v11 = vpop.permute.xlu0 %35 }
  0x8d   :  { %v40_v12 = vsel %vm39_vm0, %v34_v10, %v36_v11  ;;  %v41_v13 = vsel %vm39_vm0, %v36_v11, %v34_v10 }
  0x8e   :  { %v44_v14 = vcombine.low %v40_v12, %v41_v13 }
  0x90   :  { %v51_v15 = vrot.slane %v44_v14, %v28_v5 }
  0x92   :  { %v53_v16 = vadd.f32 %v51_v15, %v21_v6 }
  0x94   :  { %v61_v17 = vrot.slane %v53_v16, %v28_v5 }
  0x96   :  { %65 = vrot.lane.b32.xlu1 %v61_v17, %s155_s0  ;;  %v62_v18 = vcombine.high %v61_v17, %v61_v17 }
  0x9a   :  { %67 = vrot.lane.b32.xlu1 %v62_v18, %s155_s0 }
 0x108   :  { %v66_v19 = vpop.permute.xlu1 %65 }
 0x10c   :  { %v68_v20 = vpop.permute.xlu1 %67 }
 0x10d   :  { %v70_v21 = vsel %vm69_vm1, %v66_v19, %v68_v20  ;;  %v71_v22 = vsel %vm69_vm1, %v68_v20, %v66_v19 }
 0x10e   :  { %v74_v23 = vcombine.low %v70_v21, %v71_v22 }
 0x110   :  { %v81_v24 = vrot.slane %v74_v23, %v28_v5 }
 0x112   :  { %v83_v25 = vadd.f32 %v81_v24, %v53_v16 }
 0x114   :  { %v84_v26 = vmul.f32 -1000000.0, %v83_v25 }
 0x116   :  { %v85_v27 = vadd.f32 1000000.0, %v84_v26 }
 0x118   :  { %v86_v28 = vmax.f32 %v85_v27, 0.0 }
 0x11a   :  { %87 = vst [vmem:[#allocation5] sm:$0xf] %v86_v28 }
 0x11b   :  { %139 = shalt.err (!%p136_p9)
}
 0x11c   :  { %97 = dma.vmem_to_hbm [thread:$0]  %s95_s13, 64, %s174_s1, [#allocation4]  }
 0x11d   :  { %150 = dma.done.wait [#allocation4], 64  }
 0x11e   :  { %151 = vsyncadd [#allocation4], 4294967232 }
 0x11f   :  { %101 = vsyncpa [#allocation3], 1 }
 0x120   :  { %102 = vsyncpa [#allocation4], 1 }

</bundles_post_ra>
